<compile_context>
chip_gen: v7x
topology: tpu7x:2x2x1
jax: 0.10.0
libtpu: 0.0.40
codegen_flags: <defaults>
</compile_context>

<pallas_src>
import jax
import jax.numpy as jnp
from jax.experimental import pallas as pl
from jax.experimental.pallas import tpu as pltpu


def _attn_pool_kernel(x_ref, w_ref, b_ref, ctx_ref, wts_ref):
    # x_ref:   (TB, S, H)  native dtype (f32 or bf16)
    # w_ref:   (1, 1, H)   f32 projection weight (VMEM-resident, constant map)
    # b_ref:   (1, 1, 1)   f32 projection bias
    # ctx_ref: (TB, 1, H)  context output block
    # wts_ref: (TB, 1, S)  attention-weights output block
    x = x_ref[...]                                   # (TB, S, H), no f32 up-cast
    tb, s, h = x.shape
    w = jnp.broadcast_to(w_ref[...].astype(x.dtype), (tb, 1, h))   # (TB, 1, H)

    # scores[b, 0, s] = sum_h w[h] * x[b, s, h]   -- MXU, f32 accumulate
    scores = jnp.einsum(
        "bqh,bsh->bqs", w, x,
        preferred_element_type=jnp.float32,
        precision=jax.lax.Precision.HIGHEST,
    )                                                # (TB, 1, S) f32
    scores = scores + b_ref[...]                     # bias broadcasts (1,1,1)

    # Numerically-stable softmax over the sequence axis (dim=1 of the module).
    m = jnp.max(scores, axis=-1, keepdims=True)      # (TB, 1, 1)
    e = jnp.exp(scores - m)                          # (TB, 1, S)
    denom = jnp.sum(e, axis=-1, keepdims=True)       # (TB, 1, 1)
    wts = e / denom                                  # (TB, 1, S) f32

    # context[b, 0, h] = sum_s wts[b, s] * x[b, s, h]   -- MXU, f32 accumulate
    ctx = jnp.einsum(
        "bqs,bsh->bqh", wts.astype(x.dtype), x,
        preferred_element_type=jnp.float32,
        precision=jax.lax.Precision.HIGHEST,
    )                                                # (TB, 1, H) f32

    ctx_ref[...] = ctx.astype(ctx_ref.dtype)
    wts_ref[...] = wts.astype(wts_ref.dtype)


def _vmem_capacity_bytes():
    try:
        return int(pltpu.get_tpu_info().vmem_capacity_bytes)
    except Exception:
        return 64 << 20   # conservative (v7x-class) fallback


def _pick_batch_tile(B, S, H, itemsize, vmem_cap):
    """Largest batch tile whose native-dtype x-block fits a generation-aware
    VMEM budget, counting double-buffering; the MXU formulation only adds
    O(TB*S + TB*H) f32 side arrays on top of the block itself."""
    if vmem_cap <= (64 << 20):       # v7x-class TensorCore: 64 MiB VMEM
        block_budget = 8 << 20
    else:                            # v5e / v6e: 128 MiB VMEM
        block_budget = 16 << 20

    # TODO(synk): tiny-batch / very-long-sequence inputs (S*H*itemsize far above
    # block_budget) would need an extra sequence-axis tiling with a two-pass
    # softmax; with batch-only tiling those blocks are clamped to TB=1.
    row_bytes = max(1, S * H * itemsize)
    tb = max(1, block_budget // row_bytes)
    tb = int(min(tb, B))
    if tb >= 8:
        tb = (tb // 8) * 8

    # Keep >=2 (ideally >=4) grid steps so dimension_semantics=("parallel",)
    # can shard the batch across v7x's two TensorCores; cheap elsewhere.
    if B >= 32:
        tb = min(tb, max(8, ((B // 4) // 8) * 8))
    elif B >= 16:
        tb = min(tb, max(8, ((B // 2) // 8) * 8))

    # Prefer a tile that divides B (no ragged, masked last tile), but never
    # shrink below half the budgeted tile.
    if 1 < tb < B and B % tb != 0:
        for cand in range(tb, max(tb // 2, 1) - 1, -1):
            if B % cand == 0:
                tb = cand
                break
    return tb


def attention_pool(lstm_out, w, b):
    """lstm_out: (B, S, H); w: (H,); b: (1,).  Returns (context (B,H), weights (B,S))."""
    B, S, H = lstm_out.shape
    w3 = jnp.asarray(w, dtype=jnp.float32).reshape(1, 1, H)
    b3 = jnp.asarray(b, dtype=jnp.float32).reshape(1, 1, 1)

    itemsize = jnp.dtype(lstm_out.dtype).itemsize
    vmem_cap = _vmem_capacity_bytes()
    TB = _pick_batch_tile(B, S, H, itemsize, vmem_cap)
    block_bytes = TB * S * H * itemsize
    # Cover double-buffered input blocks + outputs + slack, stay off the ceiling.
    vmem_limit = int(min(vmem_cap * 3 // 4,
                         max(32 << 20, 3 * block_bytes + (16 << 20))))
    grid = (pl.cdiv(B, TB),)

    cost = pl.CostEstimate(
        flops=int(4 * B * S * H),                        # two matvec contractions
        transcendentals=int(B * S),                      # exp in softmax
        bytes_accessed=int(B * S * H * itemsize          # lstm_out read once
                           + (B * H + B * S) * itemsize  # outputs
                           + (H + 1) * 4),               # weight + bias
    )

    ctx3, wts3 = pl.pallas_call(
        _attn_pool_kernel,
        out_shape=(
            jax.ShapeDtypeStruct((B, 1, H), lstm_out.dtype),
            jax.ShapeDtypeStruct((B, 1, S), lstm_out.dtype),
        ),
        grid_spec=pltpu.PrefetchScalarGridSpec(
            num_scalar_prefetch=0,
            grid=grid,
            in_specs=[
                pl.BlockSpec((TB, S, H), lambda i: (i, 0, 0)),   # activations, batch-tiled
                pl.BlockSpec((1, 1, H), lambda i: (0, 0, 0)),    # weight, VMEM-resident
                pl.BlockSpec((1, 1, 1), lambda i: (0, 0, 0)),    # bias, VMEM-resident
            ],
            out_specs=(
                pl.BlockSpec((TB, 1, H), lambda i: (i, 0, 0)),   # context
                pl.BlockSpec((TB, 1, S), lambda i: (i, 0, 0)),   # attention weights
            ),
        ),
        compiler_params=pltpu.CompilerParams(
            dimension_semantics=("parallel",),
            vmem_limit_bytes=vmem_limit,
        ),
        cost_estimate=cost,
    )(lstm_out, w3, b3)

    return ctx3.reshape(B, H), wts3.reshape(B, S)


if __name__ == "__main__":
    B, S, H = 2, 8, 32
    key = jax.random.PRNGKey(0)
    kx, kw, kb = jax.random.split(key, 3)
    x = jax.random.normal(kx, (B, S, H), dtype=jnp.float32)
    w = jax.random.normal(kw, (H,), dtype=jnp.float32) * (1.0 / jnp.sqrt(H))
    b = jax.random.normal(kb, (1,), dtype=jnp.float32) * 0.1

    ctx, wts = attention_pool(x, w, b)
    ctx, wts = jax.block_until_ready((ctx, wts))

    # Pure-JAX reference (same math as the PyTorch forward); explicit mul+sum
    # keeps the reference off the MXU so it is exact f32.
    scores_ref = jnp.sum(x * w[None, None, :], axis=-1) + b[0]
    wts_ref = jax.nn.softmax(scores_ref, axis=1)
    ctx_ref = jnp.sum(x * wts_ref[:, :, None], axis=1)

    assert ctx.shape == (B, H) and wts.shape == (B, S)
    # Tolerance allows for MXU accumulation/rounding differences vs pure-f32 VPU ref.
    assert jnp.allclose(wts, wts_ref, atol=2e-3, rtol=2e-3), "attention weights mismatch vs reference"
    assert jnp.allclose(ctx, ctx_ref, atol=2e-3, rtol=2e-3), "context mismatch vs reference"

    print("KERNEL_OK")
</pallas_src>

<mosaic_0001>
module attributes {stable_mosaic.version = 11 : i64} {
  func.func @_attn_pool_kernel(%arg0: i32, %arg1: memref<2x8x32xf32, #tpu.memory_space<vmem>>, %arg2: memref<1x1x32xf32, #tpu.memory_space<vmem>>, %arg3: memref<1x1x1xf32, #tpu.memory_space<vmem>>, %arg4: memref<2x1x32xf32, #tpu.memory_space<vmem>>, %arg5: memref<2x1x8xf32, #tpu.memory_space<vmem>>) attributes {dimension_semantics = [#tpu.dimension_semantics<parallel>], iteration_bounds = array<i64: 1>, scalar_prefetch = 0 : i64, scratch_operands = 0 : i64, tpu.core_type = #tpu.core_type<tc>, window_params = [{transform_indices = @transform_0, window_bounds = array<i64: 2, 8, 32>}, {pipeline_mode = #tpu.pipeline_mode<synchronous>, transform_indices = @transform_1, window_bounds = array<i64: 1, 1, 32>}, {pipeline_mode = #tpu.pipeline_mode<synchronous>, transform_indices = @transform_2, window_bounds = array<i64: 1, 1, 1>}, {transform_indices = @transform_3, window_bounds = array<i64: 2, 1, 32>}, {transform_indices = @transform_4, window_bounds = array<i64: 2, 1, 8>}]} {
    %c0 = arith.constant 0 : index
    %c0_0 = arith.constant 0 : index
    %c0_1 = arith.constant 0 : index
    %0 = vector.load %arg1[%c0, %c0_0, %c0_1] : memref<2x8x32xf32, #tpu.memory_space<vmem>>, vector<2x8x32xf32>
    %c0_2 = arith.constant 0 : index
    %c0_3 = arith.constant 0 : index
    %c0_4 = arith.constant 0 : index
    %1 = vector.load %arg2[%c0_2, %c0_3, %c0_4] : memref<1x1x32xf32, #tpu.memory_space<vmem>>, vector<1x1x32xf32>
    %2 = vector.shape_cast %1 : vector<1x1x32xf32> to vector<1x1x32xf32>
    %3 = vector.broadcast %2 : vector<1x1x32xf32> to vector<2x1x32xf32>
    "tpu.trace_start"() <{level = 10 : i32, message = "bqh,bsh->bqs"}> : () -> ()
    %cst = arith.constant dense<0.000000e+00> : vector<2x1x8xf32>
    %4 = tpu.matmul %3, %0, %cst {dimension_numbers = #tpu.dot_dimension_numbers<[2], [2], [1], [1], [0, 0, 0, 1, 1, 1], [0], [0]>, precision = #tpu.contract_precision<fp32>} : vector<2x1x32xf32>, vector<2x8x32xf32>, vector<2x1x8xf32> -> vector<2x1x8xf32>
    "tpu.trace_stop"() : () -> ()
    %c0_5 = arith.constant 0 : index
    %c0_6 = arith.constant 0 : index
    %c0_7 = arith.constant 0 : index
    %5 = vector.load %arg3[%c0_5, %c0_6, %c0_7] : memref<1x1x1xf32, #tpu.memory_space<vmem>>, vector<1x1x1xf32>
    %6 = vector.broadcast %5 : vector<1x1x1xf32> to vector<2x1x8xf32>
    %7 = arith.addf %4, %6 : vector<2x1x8xf32>
    %cst_8 = arith.constant dense<0xFF800000> : vector<2x1xf32>
    %8 = vector.multi_reduction <maximumf>, %7, %cst_8 [2] : vector<2x1x8xf32> to vector<2x1xf32>
    %9 = vector.shape_cast %8 : vector<2x1xf32> to vector<2x1x1xf32>
    %10 = vector.broadcast %9 : vector<2x1x1xf32> to vector<2x1x8xf32>
    %11 = arith.subf %7, %10 : vector<2x1x8xf32>
    %12 = math.exp %11 : vector<2x1x8xf32>
    %cst_9 = arith.constant dense<0.000000e+00> : vector<2x1xf32>
    %13 = vector.multi_reduction <add>, %12, %cst_9 [2] : vector<2x1x8xf32> to vector<2x1xf32>
    %14 = vector.shape_cast %13 : vector<2x1xf32> to vector<2x1x1xf32>
    %15 = vector.broadcast %14 : vector<2x1x1xf32> to vector<2x1x8xf32>
    %16 = arith.divf %12, %15 : vector<2x1x8xf32>
    "tpu.trace_start"() <{level = 10 : i32, message = "bqs,bsh->bqh"}> : () -> ()
    %cst_10 = arith.constant dense<0.000000e+00> : vector<2x1x32xf32>
    %17 = tpu.matmul %16, %0, %cst_10 {dimension_numbers = #tpu.dot_dimension_numbers<[2], [1], [1], [2], [0, 0, 0, 1, 1, 2], [0], [0]>, precision = #tpu.contract_precision<fp32>} : vector<2x1x8xf32>, vector<2x8x32xf32>, vector<2x1x32xf32> -> vector<2x1x32xf32>
    "tpu.trace_stop"() : () -> ()
    %c0_11 = arith.constant 0 : index
    %c0_12 = arith.constant 0 : index
    %c0_13 = arith.constant 0 : index
    %18 = vector.load %arg4[%c0_11, %c0_12, %c0_13] : memref<2x1x32xf32, #tpu.memory_space<vmem>>, vector<2x1x32xf32>
    tpu.vector_store %arg4[%c0_11, %c0_12, %c0_13], %17 {strides = array<i32>} : memref<2x1x32xf32, #tpu.memory_space<vmem>>, vector<2x1x32xf32>,
    %c0_14 = arith.constant 0 : index
    %c0_15 = arith.constant 0 : index
    %c0_16 = arith.constant 0 : index
    %19 = vector.load %arg5[%c0_14, %c0_15, %c0_16] : memref<2x1x8xf32, #tpu.memory_space<vmem>>, vector<2x1x8xf32>
    tpu.vector_store %arg5[%c0_14, %c0_15, %c0_16], %16 {strides = array<i32>} : memref<2x1x8xf32, #tpu.memory_space<vmem>>, vector<2x1x8xf32>,
    return
  }
  func.func @transform_0(%arg0: i32) -> (i32, i32, i32) {
    %c0_i32 = arith.constant 0 : i32
    %c0_i32_0 = arith.constant 0 : i32
    %c0_i32_1 = arith.constant 0 : i32
    return %arg0, %c0_i32, %c0_i32_0 : i32, i32, i32
  }
  func.func @transform_1(%arg0: i32) -> (i32, i32, i32) {
    %c0_i32 = arith.constant 0 : i32
    %c0_i32_0 = arith.constant 0 : i32
    %c0_i32_1 = arith.constant 0 : i32
    %c0_i32_2 = arith.constant 0 : i32
    return %c0_i32, %c0_i32_0, %c0_i32_1 : i32, i32, i32
  }
  func.func @transform_2(%arg0: i32) -> (i32, i32, i32) {
    %c0_i32 = arith.constant 0 : i32
    %c0_i32_0 = arith.constant 0 : i32
    %c0_i32_1 = arith.constant 0 : i32
    %c0_i32_2 = arith.constant 0 : i32
    return %c0_i32, %c0_i32_0, %c0_i32_1 : i32, i32, i32
  }
  func.func @transform_3(%arg0: i32) -> (i32, i32, i32) {
    %c0_i32 = arith.constant 0 : i32
    %c0_i32_0 = arith.constant 0 : i32
    %c0_i32_1 = arith.constant 0 : i32
    return %arg0, %c0_i32, %c0_i32_0 : i32, i32, i32
  }
  func.func @transform_4(%arg0: i32) -> (i32, i32, i32) {
    %c0_i32 = arith.constant 0 : i32
    %c0_i32_0 = arith.constant 0 : i32
    %c0_i32_1 = arith.constant 0 : i32
    return %arg0, %c0_i32, %c0_i32_0 : i32, i32, i32
  }
}

</mosaic_0001>

<bundles_post_ra>
// kernel: tpu_custom_call.1
= control target key start
LH: loop header
LB: loop body
LE: loop exit
PB: predicated region body
PF: predicated region fallthrough
CT: control target
= control target key end

     0   :  { %s2387_s0 = inlined_call_operand.hbm [shape: f32[2,8,32], index: 0, kind: input, shape index: {}]   ;;  %s2388_s1 = inlined_call_operand.vmem [shape: f32[1,1,32], index: 1, kind: input, shape index: {}]   ;;  %s2389_s2 = inlined_call_operand.<no memory space> [shape: f32[1,1,1], index: 2, kind: input, shape index: {}]   ;;  %s2390_s3 = inlined_call_operand.hbm [shape: f32[2,1,32], index: 3, kind: output, shape index: {0}]   ;;  %s2391_s4 = inlined_call_operand.hbm [shape: f32[2,1,8], index: 4, kind: output, shape index: {1}]  }
   0x1   :  { %v10_v0 = vstv %s2389_s2 }
   0x2   :  { %11 = vst [vmem:[#allocation2] sm:$0x1] %v10_v0 }
   0x3   :  { %12 = vsyncpa [#allocation4], 0 }
   0x4   :  { %13 = vsyncpa [#allocation5], 0 }
   0x5   :  { %14 = vsyncpa [#allocation8], 0  ;;  %s2210_s17 = smov [#allocation3]   ;;  %s2138_s21 = scalar_lea.hbm %s2387_s0, 256 }
   0x6   :  { %s20_s18 = sshll.u32 %s2210_s17, 4  ;;  %p2139_p0 = scmp.ne.s32.totalorder %s2387_s0, %s2138_s21  ;;  %s21_s18 = int_to_ptr.vmem [resolvable:$true] %s20_s18 }
   0x7   :  { %p2142_p1 = scmp.lt.u32.totalorder %s2138_s21, %s2387_s0 }
   0x9   :  { %p2144_p2 = pnand %p2142_p1, %p2139_p0 }
   0xb   :  { %2147 = shalt.err (!%p2144_p2)
}
   0xc   :  { %s2148_s2 = scalar_lea.vmem %s21_s18, 256  ;;  %p2153_p4 = scmp.lt.s32.totalorder %s21_s18, %s21_s18 }
   0xd   :  { %p2149_p3 = scmp.ne.s32.totalorder %s21_s18, %s2148_s2  ;;  %p2154_p5 = scmp.lt.s32.totalorder %s2148_s2, %s2148_s2 }
   0xf   :  { %p2155_p6 = por %p2154_p5, %p2153_p4 }
  0x11   :  { %p2156_p7 = pnand %p2155_p6, %p2149_p3 }
  0x13   :  { %2159 = shalt.err (!%p2156_p7)
}
  0x14   :  { %s2211_s26 = smov 128   ;;  %s2212_s27 = smov 8  }
  0x15   :  { %26 = dma.hbm_to_vmem [thread:$0]  %s2387_s0, 256, %s21_s18, [#allocation4], %s2211_s26, %s2211_s26, %s2212_s27  }
  0x16   :  { %2204 = dma.done.wait [#allocation4], 256  }
  0x17   :  { %2205 = vsyncadd [#allocation4], 4294967040  ;;  %v2213_v1 = vmov 0.0   ;;  %vm2214_vm0 = vmmov 0   ;;  %v2215_v2 = vmov 0   ;;  %vm47_vm1 = vcmask 261120  }
  0x18   :  { %1957 = vmatprep.subr.mxu0 %v2213_v1  ;;  %1987 = vmatprep.subr.mxu1 %v2213_v1  ;;  %v2266_v3 = vld [vmem:[#allocation3] sm:$0xff]  ;;  %v36_v4 = vld [vmem:[%s2388_s1] sm:$0x1]  ;;  %v2271_v5 = vld [vmem:[#allocation3 + $0x8] sm:$0xff]  ;;  %v43_v25 = vlaneseq  ;;  %vm949_vm2 = vcmask 57344   ;;  %vm972_vm3 = vcmask 64512  }
  0x19   :  { %1959 = vmatprep.mubr.msk.f32.mxu0 %vm2214_vm0, %v2213_v1  ;;  %1989 = vmatprep.mubr.msk.f32.mxu1 %vm2214_vm0, %v2213_v1  ;;  %v49_v6 = vsel %vm47_vm1, %v36_v4, 0  ;;  %v52_v7 = vsel %vm47_vm1, %v2266_v3, 0  ;;  %v501_v8 = vsel %vm47_vm1, %v2271_v5, 0  ;;  %v37_v9 = vld [vmem:[#allocation2] sm:$0x1]  ;;  %v2316_v48 = vand.u32 4294901760, %v2266_v3 }
  0x1a   :  { %2129 = vset.pattern.permute.xlu0 %v2215_v2  ;;  %v55_v10 = vand.u32 4294901760, %v52_v7  ;;  %v120_v11 = vand.u32 4294901760, %v49_v6  ;;  %v504_v12 = vand.u32 4294901760, %v501_v8  ;;  %v44_v26 = vshrl.u32 %v43_v25, 7  ;;  %s2216_s1 = smov [#allocation7]  }
  0x1b   :  { %40 = vperm.xlu0 %2129, %v37_v9   ;;  %v2321_v49 = vand.u32 4294901760, %v2271_v5  ;;  %v1054_v52 = vsub.f32 %v2266_v3, %v2316_v48  ;;  %s1893_s5 = sshll.u32 %s2216_s1, 4  ;;  %s1894_s5 = int_to_ptr.vmem [resolvable:$true] %s1893_s5 }
  0x1c   :  { %1958 = vmatpush3.xpose.msra.mxu0 %v55_v10  ;;  %v132_v13 = vsub.f32 %v52_v7, %v55_v10  ;;  %1988 = vmatpush3.xpose.msra.mxu1 %v504_v12  ;;  %v581_v14 = vsub.f32 %v501_v8, %v504_v12  ;;  %v121_v15 = vsub.f32 %v49_v6, %v120_v11  ;;  %v45_v27 = vsub.s32 0, %v44_v26  ;;  %s2160_s6 = scalar_lea.vmem %s1894_s5, 32  ;;  %p2165_p9 = scmp.lt.s32.totalorder %s1894_s5, %s1894_s5 }
  0x1d   :  { %1962 = vmatprep.subr.mxu0 %v2213_v1  ;;  %1992 = vmatprep.subr.mxu1 %v2213_v1  ;;  %v1055_v56 = vand.u32 4294901760, %v1054_v52  ;;  %v1503_v57 = vsub.f32 %v2271_v5, %v2321_v49  ;;  %p2161_p8 = scmp.ne.s32.totalorder %s1894_s5, %s2160_s6  ;;  %p2166_p10 = scmp.lt.s32.totalorder %s2160_s6, %s2160_s6 }
  0x1e   :  { %v122_v16 = vand.u32 4294901760, %v121_v15  ;;  %v133_v17 = vand.u32 4294901760, %v132_v13  ;;  %v582_v18 = vand.u32 4294901760, %v581_v14 }
  0x1f   :  { %v1056_v63 = vsub.f32 %v1054_v52, %v1055_v56  ;;  %v1504_v0 = vand.u32 4294901760, %v1503_v57  ;;  %p2167_p11 = por %p2166_p10, %p2165_p9 }
  0x20   :  { %v123_v19 = vsub.f32 %v121_v15, %v122_v16  ;;  %v134_v20 = vsub.f32 %v132_v13, %v133_v17  ;;  %v583_v21 = vsub.f32 %v581_v14, %v582_v18 }
  0x21   :  { %v1057_v7 = vand.u32 4294901760, %v1056_v63  ;;  %v1505_v8 = vsub.f32 %v1503_v57, %v1504_v0  ;;  %p2168_p12 = pnand %p2167_p11, %p2161_p8 }
  0x22   :  { %v124_v22 = vand.u32 4294901760, %v123_v19  ;;  %v135_v23 = vand.u32 4294901760, %v134_v20  ;;  %v584_v24 = vand.u32 4294901760, %v583_v21 }
  0x23   :  { %v1506_v5 = vand.u32 4294901760, %v1505_v8 }
  0x24   :  { %1960 = vmatmul.mubr.f32.vlgmr.msra.gmra.mrb[0].mxu0 %v124_v22  ;;  %1990 = vmatmul.mubr.f32.vlgmr.msra.gmra.mrb[0].mxu1 %v124_v22 }
  0x25   :  { %1963 = vmatpush3.xpose.msra.mxu0 %v135_v23  ;;  %1993 = vmatpush3.xpose.msra.mxu1 %v584_v24 }
  0x26   :  { %1964 = vmatprep.mubr.msk.f32.mxu0 %vm2214_vm0, %v2213_v1  ;;  %1967 = vmatprep.subr.mxu0 %v2213_v1 }
  0x27   :  { %1994 = vmatprep.mubr.msk.f32.mxu1 %vm2214_vm0, %v2213_v1  ;;  %1997 = vmatprep.subr.mxu1 %v2213_v1 }
  0x2c   :  { %1965 = vmatmul.mubr.f32.vlgmr.msra.gmra.mrb[0].mxu0 %v120_v11  ;;  %1995 = vmatmul.mubr.f32.vlgmr.msra.gmra.mrb[0].mxu1 %v120_v11 }
  0x2d   :  { %1968 = vmatpush3.xpose.msra.mxu0 %v132_v13  ;;  %1998 = vmatpush3.xpose.msra.mxu1 %v581_v14 }
  0x2e   :  { %1969 = vmatprep.mubr.msk.f32.mxu0 %vm2214_vm0, %v2213_v1  ;;  %1972 = vmatprep.subr.mxu0 %v2213_v1 }
  0x2f   :  { %1999 = vmatprep.mubr.msk.f32.mxu1 %vm2214_vm0, %v2213_v1  ;;  %2002 = vmatprep.subr.mxu1 %v2213_v1 }
  0x34   :  { %1970 = vmatmul.mubr.f32.vlgmr.msra.gmra.mrb[0].mxu0 %v121_v15  ;;  %2000 = vmatmul.mubr.f32.vlgmr.msra.gmra.mrb[0].mxu1 %v121_v15 }
  0x35   :  { %1973 = vmatpush3.xpose.msra.mxu0 %v55_v10  ;;  %2003 = vmatpush3.xpose.msra.mxu1 %v504_v12 }
  0x36   :  { %1974 = vmatprep.mubr.msk.f32.mxu0 %vm2214_vm0, %v2213_v1  ;;  %1977 = vmatprep.subr.mxu0 %v2213_v1 }
  0x37   :  { %2004 = vmatprep.mubr.msk.f32.mxu1 %vm2214_vm0, %v2213_v1  ;;  %2007 = vmatprep.subr.mxu1 %v2213_v1 }
  0x3c   :  { %1975 = vmatmul.mubr.f32.vlgmr.msra.gmra.mrb[0].mxu0 %v122_v16  ;;  %2005 = vmatmul.mubr.f32.vlgmr.msra.gmra.mrb[0].mxu1 %v122_v16 }
  0x3d   :  { %1978 = vmatpush3.xpose.msra.mxu0 %v133_v17  ;;  %2008 = vmatpush3.xpose.msra.mxu1 %v582_v18 }
  0x3e   :  { %1979 = vmatprep.mubr.msk.f32.mxu0 %vm2214_vm0, %v2213_v1  ;;  %1982 = vmatprep.subr.mxu0 %v2213_v1 }
  0x3f   :  { %2009 = vmatprep.mubr.msk.f32.mxu1 %vm2214_vm0, %v2213_v1  ;;  %2012 = vmatprep.subr.mxu1 %v2213_v1 }
  0x44   :  { %1980 = vmatmul.mubr.f32.vlgmr.msra.gmra.mrb[0].mxu0 %v120_v11  ;;  %2010 = vmatmul.mubr.f32.vlgmr.msra.gmra.mrb[0].mxu1 %v120_v11 }
  0x45   :  { %1983 = vmatpush3.xpose.msra.mxu0 %v55_v10  ;;  %2013 = vmatpush3.xpose.msra.mxu1 %v504_v12 }
  0x46   :  { %1984 = vmatprep.mubr.msk.f32.mxu0 %vm2214_vm0, %v2213_v1  ;;  %2014 = vmatprep.mubr.msk.f32.mxu1 %vm2214_vm0, %v2213_v1 }
  0x47   :  { %2017 = vmatprep.subr.mxu0 %v2213_v1  ;;  %2047 = vmatprep.subr.mxu1 %v2213_v1 }
  0x4c   :  { %1985 = vmatmul.mubr.f32.vlgmr.msra.gmra.mrb[0].mxu0 %v120_v11  ;;  %2015 = vmatmul.mubr.f32.vlgmr.msra.gmra.mrb[0].mxu1 %v120_v11 }
  0x4d   :  { %2019 = vmatprep.mubr.msk.f32.mxu0 %vm2214_vm0, %v2213_v1  ;;  %2049 = vmatprep.mubr.msk.f32.mxu1 %vm2214_vm0, %v2213_v1 }
  0x4e   :  { %2018 = vmatpush3.msra.mxu0 %v2316_v48  ;;  %2048 = vmatpush3.msra.mxu1 %v2321_v49 }
  0x4f   :  { %2022 = vmatprep.subr.mxu0 %v2213_v1  ;;  %2052 = vmatprep.subr.mxu1 %v2213_v1 }
  0x9a   :  { %v41_v28 = vpop.permute.xlu0 %40 }
  0x9b   :  { %v46_v29 = vrot.slane %v41_v28, %v45_v27 }
 0x11f   :  { %v496_v30 = vpop.f32.mrb[0].mxu0  ;;  %v945_v31 = vpop.f32.mrb[0].mxu1 }
 0x120   :  { %v2077_v32 = vadd.f32 %v496_v30, %v46_v29  ;;  %v2078_v33 = vadd.f32 %v945_v31, %v46_v29  ;;  %v1986_v34 = vpop.f32.mrb[1].mxu0  ;;  %v2016_v35 = vpop.f32.mrb[1].mxu1 }
 0x122   :  { %v953_v36 = vsel %vm949_vm2, %v2078_v33, -inf  ;;  %v950_v37 = vsel %vm949_vm2, %v2077_v32, -inf }
 0x123   :  { %954 = vmax.xlane.f32.xlu1 %v953_v36  ;;  %951 = vmax.xlane.f32.xlu0 %v950_v37 }
 0x1b0   :  { %v955_v38 = vpop.xlane.xlu1 %954  ;;  %v952_v39 = vpop.xlane.xlu0 %951 }
 0x1b1   :  { %v957_v40 = vsub.f32 %v2078_v33, %v955_v38  ;;  %v956_v41 = vsub.f32 %v2077_v32, %v952_v39 }
 0x1b3   :  { %v958_v42 = vmul.f32 1.442695, %v956_v41  ;;  %v960_v43 = vmul.f32 1.442695, %v957_v40 }
 0x1b5   :  { %2130 = vpow2.f32 %v958_v42 }
 0x1b6   :  { %2132 = vpow2.f32 %v960_v43 }
 0x1bf   :  { %v2131_v44 = vpop.eup %2130 }
 0x1c0   :  { %v962_v45 = vsel %vm949_vm2, %v2131_v44, 0.0  ;;  %v2133_v46 = vpop.eup %2132 }
 0x1c1   :  { %963 = vadd.xlane.f32.xlu1 %v962_v45  ;;  %v965_v47 = vsel %vm949_vm2, %v2133_v46, 0.0 }
 0x1c5   :  { %966 = vadd.xlane.f32.xlu1 %v965_v47 }
 0x24e   :  { %v964_v50 = vpop.xlane.xlu1 %963 }
 0x24f   :  { %2134 = vrcp.f32 %v964_v50 }
 0x252   :  { %v967_v51 = vpop.xlane.xlu1 %966 }
 0x253   :  { %2136 = vrcp.f32 %v967_v51 }
 0x259   :  { %v2135_v53 = vpop.eup %2134 }
 0x25a   :  { %v969_v54 = vmul.f32 %v2135_v53, %v2131_v44 }
 0x25c   :  { %1874 = vst.msk [vmem:[#allocation7] sm:$0x1] %vm949_vm2, %v969_v54  ;;  %v974_v55 = vsel %vm972_vm3, %v969_v54, 0 }
 0x25d   :  { %v2137_v58 = vpop.eup %2136  ;;  %v1042_v59 = vand.u32 4294901760, %v974_v55 }
 0x25e   :  { %v971_v60 = vmul.f32 %v2137_v58, %v2133_v46 }
 0x25f   :  { %v1043_v61 = vsub.f32 %v974_v55, %v1042_v59 }
 0x260   :  { %v1423_v62 = vsel %vm972_vm3, %v971_v60, 0  ;;  %1875 = vst.msk [vmem:[#allocation7 + $0x1] sm:$0x1] %vm949_vm2, %v971_v60 }
 0x261   :  { %v1491_v2 = vand.u32 4294901760, %v1423_v62  ;;  %v1044_v3 = vand.u32 4294901760, %v1043_v61 }
 0x263   :  { %v1045_v4 = vsub.f32 %v1043_v61, %v1044_v3  ;;  %v1492_v6 = vsub.f32 %v1423_v62, %v1491_v2 }
 0x265   :  { %v1046_v9 = vand.u32 4294901760, %v1045_v4  ;;  %v1493_v10 = vand.u32 4294901760, %v1492_v6 }
 0x267   :  { %2020 = vmatmul.mubr.f32.vlgmr.msra.gmra.mrb[2].mxu0 %v1046_v9  ;;  %v1494_v11 = vsub.f32 %v1492_v6, %v1493_v10 }
 0x268   :  { %2023 = vmatpush3.msra.mxu0 %v1057_v7  ;;  %2024 = vmatprep.mubr.msk.f32.mxu0 %vm2214_vm0, %v2213_v1 }
 0x269   :  { %v1495_v12 = vand.u32 4294901760, %v1494_v11  ;;  %2027 = vmatprep.subr.mxu0 %v2213_v1 }
 0x26b   :  { %2050 = vmatmul.mubr.f32.vlgmr.msra.gmra.mrb[2].mxu1 %v1495_v12 }
 0x26c   :  { %2053 = vmatpush3.msra.mxu1 %v1506_v5  ;;  %2054 = vmatprep.mubr.msk.f32.mxu1 %vm2214_vm0, %v2213_v1 }
 0x26d   :  { %2057 = vmatprep.subr.mxu1 %v2213_v1 }
 0x26f   :  { %2025 = vmatmul.mubr.f32.vlgmr.msra.gmra.mrb[2].mxu0 %v1042_v59 }
 0x270   :  { %2028 = vmatpush3.msra.mxu0 %v1054_v52  ;;  %2029 = vmatprep.mubr.msk.f32.mxu0 %vm2214_vm0, %v2213_v1 }
 0x271   :  { %2032 = vmatprep.subr.mxu0 %v2213_v1 }
 0x273   :  { %2055 = vmatmul.mubr.f32.vlgmr.msra.gmra.mrb[2].mxu1 %v1491_v2 }
 0x274   :  { %2058 = vmatpush3.msra.mxu1 %v1503_v57  ;;  %2059 = vmatprep.mubr.msk.f32.mxu1 %vm2214_vm0, %v2213_v1 }
 0x275   :  { %2062 = vmatprep.subr.mxu1 %v2213_v1 }
 0x277   :  { %2030 = vmatmul.mubr.f32.vlgmr.msra.gmra.mrb[2].mxu0 %v1043_v61 }
 0x278   :  { %2033 = vmatpush3.msra.mxu0 %v2316_v48  ;;  %2034 = vmatprep.mubr.msk.f32.mxu0 %vm2214_vm0, %v2213_v1 }
 0x279   :  { %2037 = vmatprep.subr.mxu0 %v2213_v1 }
 0x27b   :  { %2060 = vmatmul.mubr.f32.vlgmr.msra.gmra.mrb[2].mxu1 %v1492_v6 }
 0x27c   :  { %2063 = vmatpush3.msra.mxu1 %v2321_v49  ;;  %2064 = vmatprep.mubr.msk.f32.mxu1 %vm2214_vm0, %v2213_v1 }
 0x27d   :  { %2067 = vmatprep.subr.mxu1 %v2213_v1 }
 0x27f   :  { %2035 = vmatmul.mubr.f32.vlgmr.msra.gmra.mrb[2].mxu0 %v1044_v3 }
 0x280   :  { %2038 = vmatpush3.msra.mxu0 %v1055_v56  ;;  %2039 = vmatprep.mubr.msk.f32.mxu0 %vm2214_vm0, %v2213_v1 }
 0x281   :  { %2042 = vmatprep.subr.mxu0 %v2213_v1 }
 0x283   :  { %2065 = vmatmul.mubr.f32.vlgmr.msra.gmra.mrb[2].mxu1 %v1493_v10 }
 0x284   :  { %2068 = vmatpush3.msra.mxu1 %v1504_v0  ;;  %2069 = vmatprep.mubr.msk.f32.mxu1 %vm2214_vm0, %v2213_v1 }
 0x285   :  { %2072 = vmatprep.subr.mxu1 %v2213_v1 }
 0x287   :  { %2040 = vmatmul.mubr.f32.vlgmr.msra.gmra.mrb[2].mxu0 %v1042_v59 }
 0x288   :  { %2043 = vmatpush3.msra.mxu0 %v2316_v48  ;;  %2044 = vmatprep.mubr.msk.f32.mxu0 %vm2214_vm0, %v2213_v1 }
 0x28b   :  { %2070 = vmatmul.mubr.f32.vlgmr.msra.gmra.mrb[2].mxu1 %v1491_v2 }
 0x28c   :  { %2073 = vmatpush3.msra.mxu1 %v2321_v49  ;;  %2074 = vmatprep.mubr.msk.f32.mxu1 %vm2214_vm0, %v2213_v1 }
 0x28f   :  { %2045 = vmatmul.mubr.f32.vlgmr.msra.gmra.mrb[2].mxu0 %v1042_v59 }
 0x293   :  { %2075 = vmatmul.mubr.f32.vlgmr.msra.gmra.mrb[2].mxu1 %v1491_v2 }
 0x294   :  { %2171 = shalt.err (!%p2168_p12)
}
 0x295   :  { %s2172_s9 = scalar_lea.hbm %s2391_s4, 32 }
 0x296   :  { %p2173_p13 = scmp.ne.s32.totalorder %s2391_s4, %s2172_s9  ;;  %p2176_p0 = scmp.lt.u32.totalorder %s2172_s9, %s2391_s4 }
 0x298   :  { %p2178_p1 = pnand %p2176_p0, %p2173_p13 }
 0x29a   :  { %2181 = shalt.err (!%p2178_p1)
}
 0x29b   :  { %s2217_s14 = smov 16   ;;  %s2218_s15 = smov 1   ;;  %vm1871_vm4 = vcmask 253952  }
 0x29c   :  { %1899 = dma.vmem_to_hbm [thread:$0]  %s1894_s5, 32, %s2391_s4, [#allocation8], %s2217_s14, %s2217_s14, %s2218_s15  }
 0x29d   :  { %s2219_s18 = smov [#allocation6]  }
 0x29e   :  { %s1881_s19 = sshll.u32 %s2219_s18, 4  ;;  %s1882_s19 = int_to_ptr.vmem [resolvable:$true] %s1881_s19 }
 0x29f   :  { %s2182_s20 = scalar_lea.vmem %s1882_s19, 32  ;;  %p2187_p3 = scmp.lt.s32.totalorder %s1882_s19, %s1882_s19 }
 0x2a0   :  { %p2183_p2 = scmp.ne.s32.totalorder %s1882_s19, %s2182_s20  ;;  %p2188_p4 = scmp.lt.s32.totalorder %s2182_s20, %s2182_s20 }
 0x2a2   :  { %p2189_p5 = por %p2188_p4, %p2187_p3 }
 0x2a4   :  { %p2190_p6 = pnand %p2189_p5, %p2183_p2 }
 0x362   :  { %v1418_v1 = vpop.f32.mrb[2].mxu0 }
 0x363   :  { %1872 = vst.msk [vmem:[#allocation6] sm:$0x1] %vm1871_vm4, %v1418_v1  ;;  %v2046_v13 = vpop.f32.mrb[3].mxu0 }
 0x366   :  { %v1867_v14 = vpop.f32.mrb[2].mxu1 }
 0x367   :  { %1873 = vst.msk [vmem:[#allocation6 + $0x1] sm:$0x1] %vm1871_vm4, %v1867_v14  ;;  %v2076_v15 = vpop.f32.mrb[3].mxu1 }
 0x368   :  { %2193 = shalt.err (!%p2190_p6)
}
 0x369   :  { %s2194_s4 = scalar_lea.hbm %s2390_s3, 32 }
 0x36a   :  { %p2195_p7 = scmp.ne.s32.totalorder %s2390_s3, %s2194_s4  ;;  %p2198_p8 = scmp.lt.u32.totalorder %s2194_s4, %s2390_s3 }
 0x36c   :  { %p2200_p9 = pnand %p2198_p8, %p2195_p7 }
 0x36e   :  { %2203 = shalt.err (!%p2200_p9)
}
 0x36f   :  { %1887 = dma.vmem_to_hbm [thread:$0]  %s1882_s19, 32, %s2390_s3, [#allocation5], %s2217_s14, %s2217_s14, %s2218_s15  }
 0x370   :  { %2206 = dma.done.wait [#allocation5], 32  }
 0x371   :  { %2207 = vsyncadd [#allocation5], 4294967264 }
 0x372   :  { %2208 = dma.done.wait [#allocation8], 32  }
 0x373   :  { %2209 = vsyncadd [#allocation8], 4294967264 }
 0x374   :  { %1906 = vsyncpa [#allocation4], 1 }
 0x375   :  { %1907 = vsyncpa [#allocation5], 1 }
 0x376   :  { %1908 = vsyncpa [#allocation8], 1 }

</bundles_post_ra>
